<compile_context>
chip_gen: v7x
topology: tpu7x:2x2x1
jax: 0.10.0
libtpu: 0.0.40
codegen_flags: <defaults>
</compile_context>

<pallas_src>
import functools

import jax
import jax.numpy as jnp
from jax.experimental import pallas as pl
from jax.experimental.pallas import tpu as pltpu


# -----------------------------------------------------------------------------
# sizing helpers
# -----------------------------------------------------------------------------
def _vmem_capacity_bytes():
    try:
        return int(pltpu.get_tpu_info().vmem_capacity_bytes)
    except Exception:
        return 64 << 20  # conservative fallback (v7x per-core VMEM)


def _sublane_align(dtype):
    # 8 sublanes for 32-bit, 16 for 16-bit, 32 for 8-bit packed dtypes.
    return max(8, 32 // jnp.dtype(dtype).itemsize)


def _pick_tile(dim, target, align):
    """Largest tile <= target that divides `dim` and is a multiple of `align`.

    Falls back to the full dimension, which is always a legal block size and
    trivially divides `dim` (no partial blocks -> reductions never see padding).
    """
    if dim <= target:
        return dim
    t = (min(target, dim) // align) * align
    while t >= align:
        if dim % t == 0:
            return t
        t -= align
    return dim


def _fused_c_tile(C, N, HW, in_bytes, out_bytes, align, budget):
    """Channel tile for the fused single-read path, or None if nothing fits."""
    def est(ct):
        slab = N * ct * HW
        # 2x input bufs + 2x output bufs + ~2 slab-sized f32 temporaries.
        return 2 * slab * in_bytes + 2 * slab * out_bytes + 2 * slab * 4

    cands = sorted({C} | {t for t in range(align, C, align) if C % t == 0},
                   reverse=True)
    fitting = [ct for ct in cands if est(ct) <= budget]
    if not fitting:
        return None
    # Prefer >= 2 channel groups so v7x megacore has work for both TensorCores.
    multi = [ct for ct in fitting if C // ct >= 2]
    return multi[0] if multi else fitting[0]


def _two_pass_tiles(C, HW, in_bytes, out_bytes, align, budget, c_target, hw_target):
    """Tiles for the two-pass fallback, shrunk until the live footprint fits."""
    def est(ct, hwt):
        blk = ct * hwt
        return 2 * blk * in_bytes + 2 * blk * out_bytes + 2 * blk * 4

    c_t = _pick_tile(C, c_target, align)
    hw_t = _pick_tile(HW, hw_target, 128)
    # Shrink the channel tile first (keep lanes dense), then the spatial tile.
    while est(c_t, hw_t) > budget and c_t // 2 >= align:
        smaller = _pick_tile(C, c_t // 2, align)
        if smaller >= c_t:
            break
        c_t = smaller
    while est(c_t, hw_t) > budget and hw_t // 2 >= 128:
        smaller = _pick_tile(HW, hw_t // 2, 128)
        if smaller >= hw_t:
            break
        hw_t = smaller
    return c_t, hw_t


# -----------------------------------------------------------------------------
# fused single-read kernel: stats + normalize on a resident (N, c_t, HW) slab
# -----------------------------------------------------------------------------
def _fused_kernel(x_ref, w_ref, b_ref, y_ref, rowsum_ref, chsumsq_ref, *, eps):
    x = x_ref[...].astype(jnp.float32)                    # (N, c_t, HW)
    rowsum = jnp.sum(x, axis=-1, keepdims=True)           # (N, c_t, 1)
    rowsumsq = jnp.sum(x * x, axis=-1, keepdims=True)     # (N, c_t, 1)
    rowsum_ref[...] = rowsum

    ch_sum = jnp.sum(rowsum, axis=0)                      # (c_t, 1)
    ch_sumsq = jnp.sum(rowsumsq, axis=0)                  # (c_t, 1)
    chsumsq_ref[...] = ch_sumsq

    count = jnp.float32(x.shape[0] * x.shape[-1])
    mean = ch_sum / count
    var = jnp.maximum(ch_sumsq / count - mean * mean, 0.0)
    inv = jax.lax.rsqrt(var + eps)
    scale = w_ref[...] * inv                               # (c_t, 1)
    shift = b_ref[...] - mean * scale                      # (c_t, 1)

    y = x * scale[None] + shift[None]                      # (N, c_t, HW)
    y_ref[...] = y.astype(y_ref.dtype)


# -----------------------------------------------------------------------------
# two-pass fallback, pass 1: per-(n, c) sum / sum-of-squares over HW tiles
# (accumulated directly into per-(n, c) output blocks; no scratch, no scatter)
# -----------------------------------------------------------------------------
def _stats_kernel(x_ref, rowsum_ref, rowsumsq_ref):
    @pl.when(pl.program_id(2) == 0)
    def _():
        rowsum_ref[...] = jnp.zeros_like(rowsum_ref)
        rowsumsq_ref[...] = jnp.zeros_like(rowsumsq_ref)

    x = x_ref[0].astype(jnp.float32)                       # (c_t, hw_t)
    rowsum_ref[0] += jnp.sum(x, axis=-1, keepdims=True)    # (c_t, 1)
    rowsumsq_ref[0] += jnp.sum(x * x, axis=-1, keepdims=True)


# -----------------------------------------------------------------------------
# two-pass fallback, pass 2: y = scale * x + shift (normalize + affine folded)
# -----------------------------------------------------------------------------
def _normalize_kernel(x_ref, scale_ref, shift_ref, y_ref):
    s = scale_ref[...]                                      # (c_t, 1), compute dtype
    y = x_ref[0].astype(s.dtype) * s + shift_ref[...]
    y_ref[0] = y.astype(y_ref.dtype)


# -----------------------------------------------------------------------------
# wrapper
# -----------------------------------------------------------------------------
def intra_bn_2d_forward(x_nchw, weight, bias, fc_w, fc_b, class_idx=0, eps=1e-5,
                        *, force_two_pass=False, c_tile_target=128,
                        hw_tile_target=8192):
    """Returns (y_nchw, det_bn) mirroring intra_BN_2d training forward."""
    N, C, H, W = x_nchw.shape
    HW = H * W

    x3d = x_nchw.reshape(N, C, HW)             # free, contiguous reshape
    out_dtype = x_nchw.dtype
    in_bytes = jnp.dtype(x_nchw.dtype).itemsize
    out_bytes = jnp.dtype(out_dtype).itemsize
    align = _sublane_align(x_nchw.dtype)

    cap = _vmem_capacity_bytes()
    budget = cap * 3 // 8                      # ~48 MiB on v5e/v6e, ~24 MiB on v7x
    vmem_limit = int(cap * 3 // 4)

    fused_ct = None
    if not force_two_pass:
        fused_ct = _fused_c_tile(C, N, HW, in_bytes, out_bytes, align, budget)

    two_pass_state = None

    if fused_ct is not None:
        # -------------------- fused single-read path -------------------------
        c_t = fused_ct
        n_cg = C // c_t
        w_c1 = weight.reshape(C, 1).astype(jnp.float32)
        b_c1 = bias.reshape(C, 1).astype(jnp.float32)

        y3d, rowsum3, ch_sumsq2 = pl.pallas_call(
            functools.partial(_fused_kernel, eps=eps),
            out_shape=(jax.ShapeDtypeStruct((N, C, HW), out_dtype),
                       jax.ShapeDtypeStruct((N, C, 1), jnp.float32),
                       jax.ShapeDtypeStruct((C, 1), jnp.float32)),
            grid_spec=pltpu.PrefetchScalarGridSpec(
                num_scalar_prefetch=0,
                grid=(n_cg,),
                in_specs=[pl.BlockSpec((N, c_t, HW), lambda c: (0, c, 0)),
                          pl.BlockSpec((c_t, 1), lambda c: (c, 0)),
                          pl.BlockSpec((c_t, 1), lambda c: (c, 0))],
                out_specs=(pl.BlockSpec((N, c_t, HW), lambda c: (0, c, 0)),
                           pl.BlockSpec((N, c_t, 1), lambda c: (0, c, 0)),
                           pl.BlockSpec((c_t, 1), lambda c: (c, 0)))),
            compiler_params=pltpu.CompilerParams(
                dimension_semantics=("parallel",),
                vmem_limit_bytes=vmem_limit),
        )(x3d, w_c1, b_c1)

        rowsum_nc = rowsum3[:, :, 0]                        # (N, C)
        ch_sum = jnp.sum(rowsum_nc, axis=0)                 # (C,)
        ch_sumsq = ch_sumsq2[:, 0]                          # (C,)
    else:
        # ----------------- two-pass fallback: pass 1 (stats) ------------------
        c_t, hw_t = _two_pass_tiles(C, HW, in_bytes, out_bytes, align, budget,
                                    c_tile_target, hw_tile_target)
        n_cg, n_hw = C // c_t, HW // hw_t
        grid = (n_cg, N, n_hw)
        x_spec = pl.BlockSpec((1, c_t, hw_t), lambda c, n, h: (n, c, h))
        stat_spec = pl.BlockSpec((1, c_t, 1), lambda c, n, h: (n, c, 0))

        rowsum3, rowsumsq3 = pl.pallas_call(
            _stats_kernel,
            out_shape=(jax.ShapeDtypeStruct((N, C, 1), jnp.float32),
                       jax.ShapeDtypeStruct((N, C, 1), jnp.float32)),
            grid_spec=pltpu.PrefetchScalarGridSpec(
                num_scalar_prefetch=0,
                grid=grid,
                in_specs=[x_spec],
                out_specs=(stat_spec, stat_spec)),
            compiler_params=pltpu.CompilerParams(
                dimension_semantics=("parallel", "parallel", "arbitrary"),
                vmem_limit_bytes=vmem_limit),
        )(x3d)

        rowsum_nc = rowsum3[:, :, 0]                        # (N, C)
        ch_sum = jnp.sum(rowsum_nc, axis=0)                 # (C,)
        ch_sumsq = jnp.sum(rowsumsq3[:, :, 0], axis=0)      # (C,)
        two_pass_state = (c_t, hw_t, grid, x_spec)

    # ---- tiny per-channel math in plain JAX (shared by both paths) -----------
    count = jnp.float32(N * HW)
    mean = ch_sum / count
    # Biased variance via E[x^2] - E[x]^2 (f32 accumulators; clamp for safety).
    var = jnp.maximum(ch_sumsq / count - mean * mean, 0.0)
    inv = jax.lax.rsqrt(var + eps)
    wv = weight.reshape(C).astype(jnp.float32)
    bv = bias.reshape(C).astype(jnp.float32)
    scale = wv * inv                                        # (C,)
    shift = bv - mean * scale                               # (C,)

    if fused_ct is None:
        # ----------------- two-pass fallback: pass 2 (normalize) --------------
        c_t, hw_t, grid, x_spec = two_pass_state
        # Keep 16-bit inputs in 16-bit math on the store-heavy normalize path.
        compute_dtype = (x_nchw.dtype
                         if jnp.dtype(x_nchw.dtype).itemsize == 2 else jnp.float32)
        y3d = pl.pallas_call(
            _normalize_kernel,
            out_shape=jax.ShapeDtypeStruct((N, C, HW), out_dtype),
            grid_spec=pltpu.PrefetchScalarGridSpec(
                num_scalar_prefetch=0,
                grid=grid,
                in_specs=[x_spec,
                          pl.BlockSpec((c_t, 1), lambda c, n, h: (c, 0)),
                          pl.BlockSpec((c_t, 1), lambda c, n, h: (c, 0))],
                out_specs=pl.BlockSpec((1, c_t, hw_t), lambda c, n, h: (n, c, h))),
            compiler_params=pltpu.CompilerParams(
                dimension_semantics=("parallel", "parallel", "parallel"),
                vmem_limit_bytes=vmem_limit),
        )(x3d,
          scale.reshape(C, 1).astype(compute_dtype),
          shift.reshape(C, 1).astype(compute_dtype))

    y_nchw = y3d.reshape(N, C, H, W)                        # free reshape back

    # ---- pooled + fc + CrossEntropy head (tiny, plain JAX) --------------------
    # AdaptiveAvgPool2d((1,1))(y).squeeze() derived analytically:
    #   pooled[n, c] = scale[c] * mean_hw(x[n, c]) + shift[c]
    pooled = (rowsum_nc / jnp.float32(HW)) * scale[None, :] + shift[None, :]
    logits = pooled @ fc_w.T.astype(jnp.float32) + fc_b.astype(jnp.float32)
    lse = jax.nn.logsumexp(logits, axis=-1)
    det_bn = jnp.mean(lse - logits[:, class_idx])
    return y_nchw, det_bn


# -----------------------------------------------------------------------------
# plain-JAX reference for a numerical sanity check
# -----------------------------------------------------------------------------
def _reference(x, weight, bias, fc_w, fc_b, class_idx=0, eps=1e-5):
    mean = jnp.mean(x, axis=(0, 2, 3), keepdims=True)
    var = jnp.mean((x - mean) ** 2, axis=(0, 2, 3), keepdims=True)
    y = weight * (x - mean) / jnp.sqrt(var + eps) + bias
    pooled = jnp.mean(y, axis=(2, 3))
    logits = pooled @ fc_w.T + fc_b
    det_bn = jnp.mean(jax.nn.logsumexp(logits, axis=-1) - logits[:, class_idx])
    return y, det_bn


if __name__ == "__main__":
    N, C, H, W = 2, 4, 16, 16
    class_num = 10
    class_idx = 0

    key = jax.random.PRNGKey(0)
    kx, kw, kb = jax.random.split(key, 3)

    x = jax.random.normal(kx, (N, C, H, W), dtype=jnp.float32)

    # Parameters, initialized deterministically per the module's __init__.
    weight = jnp.ones((1, C, 1, 1), jnp.float32)      # nn.Parameter(torch.ones)
    bias = jnp.zeros((1, C, 1, 1), jnp.float32)       # nn.Parameter(torch.zeros)
    bound = 1.0 / (C ** 0.5)                          # nn.Linear default init range
    fc_w = jax.random.uniform(kw, (class_num, C), jnp.float32, -bound, bound)
    fc_b = jax.random.uniform(kb, (class_num,), jnp.float32, -bound, bound)

    y_ref, det_ref = _reference(x, weight, bias, fc_w, fc_b, class_idx)

    # Fused single-read path (preferred for slabs that fit VMEM).
    y1, d1 = intra_bn_2d_forward(x, weight, bias, fc_w, fc_b, class_idx)
    y1 = jax.block_until_ready(y1)
    d1 = jax.block_until_ready(d1)
    assert jnp.allclose(y1, y_ref, atol=1e-4, rtol=1e-4)
    assert jnp.allclose(d1, det_ref, atol=1e-4, rtol=1e-4)

    # Two-pass fallback path (exercised with multiple HW tiles per sweep).
    y2, d2 = intra_bn_2d_forward(x, weight, bias, fc_w, fc_b, class_idx,
                                 force_two_pass=True, hw_tile_target=128)
    y2 = jax.block_until_ready(y2)
    d2 = jax.block_until_ready(d2)
    assert jnp.allclose(y2, y_ref, atol=1e-4, rtol=1e-4)
    assert jnp.allclose(d2, det_ref, atol=1e-4, rtol=1e-4)

    print("KERNEL_OK")
</pallas_src>

<mosaic_0001>
module attributes {stable_mosaic.version = 11 : i64} {
  func.func @_fused_kernel(%arg0: i32, %arg1: memref<2x4x256xf32, #tpu.memory_space<vmem>>, %arg2: memref<4x1xf32, #tpu.memory_space<vmem>>, %arg3: memref<4x1xf32, #tpu.memory_space<vmem>>, %arg4: memref<2x4x256xf32, #tpu.memory_space<vmem>>, %arg5: memref<2x4x1xf32, #tpu.memory_space<vmem>>, %arg6: memref<4x1xf32, #tpu.memory_space<vmem>>) attributes {dimension_semantics = [#tpu.dimension_semantics<parallel>], iteration_bounds = array<i64: 1>, scalar_prefetch = 0 : i64, scratch_operands = 0 : i64, tpu.core_type = #tpu.core_type<tc>, window_params = [{transform_indices = @transform_0, window_bounds = array<i64: 2, 4, 256>}, {transform_indices = @transform_1, window_bounds = array<i64: 4, 1>}, {transform_indices = @transform_2, window_bounds = array<i64: 4, 1>}, {transform_indices = @transform_3, window_bounds = array<i64: 2, 4, 256>}, {transform_indices = @transform_4, window_bounds = array<i64: 2, 4, 1>}, {transform_indices = @transform_5, window_bounds = array<i64: 4, 1>}]} {
    %c0 = arith.constant 0 : index
    %c0_0 = arith.constant 0 : index
    %c0_1 = arith.constant 0 : index
    %0 = vector.load %arg1[%c0, %c0_0, %c0_1] : memref<2x4x256xf32, #tpu.memory_space<vmem>>, vector<2x4x256xf32>
    %cst = arith.constant dense<0.000000e+00> : vector<2x4xf32>
    %1 = vector.multi_reduction <add>, %0, %cst [2] : vector<2x4x256xf32> to vector<2x4xf32>
    %2 = vector.shape_cast %1 : vector<2x4xf32> to vector<2x4x1xf32>
    %3 = arith.mulf %0, %0 : vector<2x4x256xf32>
    %cst_2 = arith.constant dense<0.000000e+00> : vector<2x4xf32>
    %4 = vector.multi_reduction <add>, %3, %cst_2 [2] : vector<2x4x256xf32> to vector<2x4xf32>
    %5 = vector.shape_cast %4 : vector<2x4xf32> to vector<2x4x1xf32>
    %c0_3 = arith.constant 0 : index
    %c0_4 = arith.constant 0 : index
    %c0_5 = arith.constant 0 : index
    %6 = vector.load %arg5[%c0_3, %c0_4, %c0_5] : memref<2x4x1xf32, #tpu.memory_space<vmem>>, vector<2x4x1xf32>
    tpu.vector_store %arg5[%c0_3, %c0_4, %c0_5], %2 {strides = array<i32>} : memref<2x4x1xf32, #tpu.memory_space<vmem>>, vector<2x4x1xf32>,
    %cst_6 = arith.constant dense<0.000000e+00> : vector<4x1xf32>
    %7 = vector.multi_reduction <add>, %2, %cst_6 [0] : vector<2x4x1xf32> to vector<4x1xf32>
    %cst_7 = arith.constant dense<0.000000e+00> : vector<4x1xf32>
    %8 = vector.multi_reduction <add>, %5, %cst_7 [0] : vector<2x4x1xf32> to vector<4x1xf32>
    %c0_8 = arith.constant 0 : index
    %c0_9 = arith.constant 0 : index
    %9 = vector.load %arg6[%c0_8, %c0_9] : memref<4x1xf32, #tpu.memory_space<vmem>>, vector<4x1xf32>
    tpu.vector_store %arg6[%c0_8, %c0_9], %8 {strides = array<i32>} : memref<4x1xf32, #tpu.memory_space<vmem>>, vector<4x1xf32>,
    %cst_10 = arith.constant 5.120000e+02 : f32
    %10 = vector.broadcast %cst_10 : f32 to vector<4x1xf32>
    %11 = arith.divf %7, %10 : vector<4x1xf32>
    %cst_11 = arith.constant 5.120000e+02 : f32
    %12 = vector.broadcast %cst_11 : f32 to vector<4x1xf32>
    %13 = arith.divf %8, %12 : vector<4x1xf32>
    %14 = arith.mulf %11, %11 : vector<4x1xf32>
    %15 = arith.subf %13, %14 : vector<4x1xf32>
    %cst_12 = arith.constant 0.000000e+00 : f32
    %16 = vector.broadcast %cst_12 : f32 to vector<4x1xf32>
    %17 = arith.maximumf %15, %16 : vector<4x1xf32>
    %cst_13 = arith.constant 9.99999974E-6 : f32
    %18 = vector.broadcast %cst_13 : f32 to vector<4x1xf32>
    %19 = arith.addf %17, %18 : vector<4x1xf32>
    %20 = math.rsqrt %19 : vector<4x1xf32>
    %c0_14 = arith.constant 0 : index
    %c0_15 = arith.constant 0 : index
    %21 = vector.load %arg2[%c0_14, %c0_15] : memref<4x1xf32, #tpu.memory_space<vmem>>, vector<4x1xf32>
    %22 = arith.mulf %21, %20 : vector<4x1xf32>
    %c0_16 = arith.constant 0 : index
    %c0_17 = arith.constant 0 : index
    %23 = vector.load %arg3[%c0_16, %c0_17] : memref<4x1xf32, #tpu.memory_space<vmem>>, vector<4x1xf32>
    %24 = arith.mulf %11, %22 : vector<4x1xf32>
    %25 = arith.subf %23, %24 : vector<4x1xf32>
    %26 = vector.shape_cast %22 : vector<4x1xf32> to vector<1x4x1xf32>
    %27 = vector.broadcast %26 : vector<1x4x1xf32> to vector<2x4x256xf32>
    %28 = arith.mulf %0, %27 : vector<2x4x256xf32>
    %29 = vector.shape_cast %25 : vector<4x1xf32> to vector<1x4x1xf32>
    %30 = vector.broadcast %29 : vector<1x4x1xf32> to vector<2x4x256xf32>
    %31 = arith.addf %28, %30 : vector<2x4x256xf32>
    %c0_18 = arith.constant 0 : index
    %c0_19 = arith.constant 0 : index
    %c0_20 = arith.constant 0 : index
    %32 = vector.load %arg4[%c0_18, %c0_19, %c0_20] : memref<2x4x256xf32, #tpu.memory_space<vmem>>, vector<2x4x256xf32>
    tpu.vector_store %arg4[%c0_18, %c0_19, %c0_20], %31 {strides = array<i32>} : memref<2x4x256xf32, #tpu.memory_space<vmem>>, vector<2x4x256xf32>,
    return
  }
  func.func @transform_0(%arg0: i32) -> (i32, i32, i32) {
    %c0_i32 = arith.constant 0 : i32
    %c0_i32_0 = arith.constant 0 : i32
    %c0_i32_1 = arith.constant 0 : i32
    return %c0_i32, %arg0, %c0_i32_0 : i32, i32, i32
  }
  func.func @transform_1(%arg0: i32) -> (i32, i32) {
    %c0_i32 = arith.constant 0 : i32
    %c0_i32_0 = arith.constant 0 : i32
    return %arg0, %c0_i32 : i32, i32
  }
  func.func @transform_2(%arg0: i32) -> (i32, i32) {
    %c0_i32 = arith.constant 0 : i32
    %c0_i32_0 = arith.constant 0 : i32
    return %arg0, %c0_i32 : i32, i32
  }
  func.func @transform_3(%arg0: i32) -> (i32, i32, i32) {
    %c0_i32 = arith.constant 0 : i32
    %c0_i32_0 = arith.constant 0 : i32
    %c0_i32_1 = arith.constant 0 : i32
    return %c0_i32, %arg0, %c0_i32_0 : i32, i32, i32
  }
  func.func @transform_4(%arg0: i32) -> (i32, i32, i32) {
    %c0_i32 = arith.constant 0 : i32
    %c0_i32_0 = arith.constant 0 : i32
    %c0_i32_1 = arith.constant 0 : i32
    return %c0_i32, %arg0, %c0_i32_0 : i32, i32, i32
  }
  func.func @transform_5(%arg0: i32) -> (i32, i32) {
    %c0_i32 = arith.constant 0 : i32
    %c0_i32_0 = arith.constant 0 : i32
    return %arg0, %c0_i32 : i32, i32
  }
}

</mosaic_0001>

<bundles_post_ra>
// kernel: tpu_custom_call.1
= control target key start
LH: loop header
LB: loop body
LE: loop exit
PB: predicated region body
PF: predicated region fallthrough
CT: control target
= control target key end

     0   :  { %11 = vsyncpa [#allocation3], 0  ;;  %s316_s0 = inlined_call_operand.hbm [shape: f32[2,4,256], index: 0, kind: input, shape index: {}]   ;;  %s317_s1 = inlined_call_operand.vmem [shape: f32[4,1], index: 1, kind: input, shape index: {}]   ;;  %s318_s2 = inlined_call_operand.vmem [shape: f32[4,1], index: 2, kind: input, shape index: {}]   ;;  %s319_s3 = inlined_call_operand.hbm [shape: f32[2,4,256], index: 3, kind: output, shape index: {0}]   ;;  %s320_s4 = inlined_call_operand.vmem [shape: f32[2,4,1], index: 4, kind: output, shape index: {1}]   ;;  %s321_s5 = inlined_call_operand.vmem [shape: f32[4,1], index: 5, kind: output, shape index: {2}]  }
   0x1   :  { %12 = vsyncpa [#allocation4], 0  ;;  %s207_s18 = smov [#allocation2]   ;;  %s159_s22 = scalar_lea.hbm %s316_s0, 256 }
   0x2   :  { %s18_s19 = sshll.u32 %s207_s18, 4  ;;  %p160_p0 = scmp.ne.s32.totalorder %s316_s0, %s159_s22  ;;  %s19_s19 = int_to_ptr.vmem [resolvable:$true] %s18_s19 }
   0x3   :  { %p163_p1 = scmp.lt.u32.totalorder %s159_s22, %s316_s0 }
   0x5   :  { %p165_p2 = pnand %p163_p1, %p160_p0 }
   0x7   :  { %168 = shalt.err (!%p165_p2)
}
   0x8   :  { %s169_s27 = scalar_lea.vmem %s19_s19, 256  ;;  %p174_p4 = scmp.lt.s32.totalorder %s19_s19, %s19_s19 }
   0x9   :  { %p170_p3 = scmp.ne.s32.totalorder %s19_s19, %s169_s27  ;;  %p175_p5 = scmp.lt.s32.totalorder %s169_s27, %s169_s27 }
   0xb   :  { %p176_p6 = por %p175_p5, %p174_p4 }
   0xd   :  { %p177_p7 = pnand %p176_p6, %p170_p3 }
   0xf   :  { %180 = shalt.err (!%p177_p7)
}
  0x10   :  { %s208_s28 = smov 128   ;;  %s209_s29 = smov 8  }
  0x11   :  { %24 = dma.hbm_to_vmem [thread:$0]  %s316_s0, 256, %s19_s19, [#allocation3], %s208_s28, %s208_s28, %s209_s29  }
  0x12   :  { %203 = dma.done.wait [#allocation3], 256  }
  0x13   :  { %204 = vsyncadd [#allocation3], 4294967040  ;;  %vm40_vm0 = vcmask 1043456   ;;  %v258_v0 = vld [vmem:[#allocation2] sm:$0xff]  ;;  %v260_v1 = vld [vmem:[#allocation2 + $0x8] sm:$0xff]  ;;  %v210_v20 = vmov 0   ;;  %v99_v45 = vlaneseq }
  0x14   :  { %v36_v2 = vcombine.high %v258_v0, %v258_v0  ;;  %v41_v3 = vsel %vm40_vm0, %v258_v0, 0.0  ;;  %v51_v4 = vmul.f32 %v258_v0, %v258_v0  ;;  %v37_v5 = vcombine.high %v260_v1, %v260_v1  ;;  %153 = vset.pattern.permute.xlu0 %v210_v20  ;;  %154 = vset.pattern.permute.xlu1 %v210_v20  ;;  %v87_v37 = vld [vmem:[%s317_s1] sm:$0xf]  ;;  %s212_s1 = smov [#allocation5]  }
  0x15   :  { %v46_v6 = vsel %vm40_vm0, %v260_v1, 0.0  ;;  %v52_v7 = vmul.f32 %v260_v1, %v260_v1  ;;  %vm69_vm1 = vcmask 3072   ;;  %v89_v40 = vld [vmem:[%s318_s2] sm:$0xf]  ;;  %v211_v43 = vmov 839922192  }
  0x16   :  { %v42_v8 = vsel %vm40_vm0, %v36_v2, 0.0  ;;  %v55_v9 = vcombine.high %v51_v4, %v51_v4  ;;  %v59_v10 = vsel %vm40_vm0, %v51_v4, 0.0  ;;  %v47_v11 = vsel %vm40_vm0, %v37_v5, 0.0 }
  0x17   :  { %v43_v12 = vadd.f32 %v42_v8, %v41_v3  ;;  %v56_v13 = vcombine.high %v52_v7, %v52_v7  ;;  %v64_v15 = vsel %vm40_vm0, %v52_v7, 0.0  ;;  %v48_v17 = vadd.f32 %v47_v11, %v46_v6 }
  0x18   :  { %v60_v14 = vsel %vm40_vm0, %v55_v9, 0.0  ;;  %v97_v44 = vunpack.c.l.s4 %v211_v43  ;;  %v100_v47 = vshrl.u32 %v99_v45, 7 }
  0x19   :  { %44 = vadd.xlane.f32.xlu0 %v43_v12  ;;  %v61_v16 = vadd.f32 %v60_v14, %v59_v10  ;;  %v65_v18 = vsel %vm40_vm0, %v56_v13, 0.0 }
  0x1a   :  { %v66_v19 = vadd.f32 %v65_v18, %v64_v15  ;;  %v98_v46 = vunpack.c.0.s8 %v97_v44 }
  0x1b   :  { %62 = vadd.xlane.f32.xlu1 %v61_v16 }
  0x1c   :  { %v101_v48 = vsub.s32 %v98_v46, %v100_v47 }
  0x1d   :  { %49 = vadd.xlane.f32.xlu0 %v48_v17 }
  0x1f   :  { %67 = vadd.xlane.f32.xlu1 %v66_v19 }
  0xa6   :  { %v45_v21 = vpop.xlane.xlu0 %44 }
  0xa7   :  { %70 = vst.msk [vmem:[%s320_s4] sm:$0xf] %vm69_vm1, %v45_v21  ;;  %v72_v24 = vsel %vm40_vm0, %v45_v21, 0.0 }
  0xa8   :  { %v63_v22 = vpop.xlane.xlu1 %62 }
  0xa9   :  { %v75_v28 = vsel %vm40_vm0, %v63_v22, 0.0 }
  0xaa   :  { %v50_v23 = vpop.xlane.xlu0 %49 }
  0xab   :  { %71 = vst.msk [vmem:[%s320_s4 + $0x4] sm:$0xf] %vm69_vm1, %v50_v23  ;;  %v73_v25 = vsel %vm40_vm0, %v50_v23, 0.0 }
  0xac   :  { %v74_v26 = vadd.f32 %v73_v25, %v72_v24  ;;  %v68_v27 = vpop.xlane.xlu1 %67 }
  0xad   :  { %v76_v29 = vsel %vm40_vm0, %v68_v27, 0.0 }
  0xae   :  { %v80_v30 = vmul.f32 0.001953125, %v74_v26  ;;  %v77_v31 = vadd.f32 %v76_v29, %v75_v28 }
  0xb0   :  { %v82_v32 = vmul.f32 %v80_v30, %v80_v30  ;;  %78 = vst.msk [vmem:[%s321_s5] sm:$0xf] %vm69_vm1, %v77_v31  ;;  %v81_v33 = vmul.f32 0.001953125, %v77_v31  ;;  %s127_s5 = sshll.u32 %s212_s1, 4  ;;  %s128_s5 = int_to_ptr.vmem [resolvable:$true] %s127_s5 }
  0xb1   :  { %s181_s2 = scalar_lea.vmem %s128_s5, 256  ;;  %p186_p9 = scmp.lt.s32.totalorder %s128_s5, %s128_s5 }
  0xb2   :  { %v83_v34 = vsub.f32 %v81_v33, %v82_v32  ;;  %p182_p8 = scmp.ne.s32.totalorder %s128_s5, %s181_s2  ;;  %p187_p10 = scmp.lt.s32.totalorder %s181_s2, %s181_s2 }
  0xb4   :  { %v84_v35 = vmax.f32 %v83_v34, 0.0  ;;  %p188_p11 = por %p187_p10, %p186_p9 }
  0xb6   :  { %v85_v36 = vadd.f32 1e-05, %v84_v35  ;;  %p189_p12 = pnand %p188_p11, %p182_p8 }
  0xb8   :  { %157 = vrsqrt.f32 %v85_v36 }
  0xc2   :  { %v158_v38 = vpop.eup %157 }
  0xc3   :  { %v88_v39 = vmul.f32 %v158_v38, %v87_v37 }
  0xc5   :  { %94 = vperm.xlu0 %153, %v88_v39   ;;  %v90_v41 = vmul.f32 %v88_v39, %v80_v30 }
  0xc7   :  { %v91_v42 = vsub.f32 %v89_v40, %v90_v41 }
  0xc9   :  { %108 = vperm.xlu1 %154, %v91_v42  }
 0x144   :  { %v95_v49 = vpop.permute.xlu0 %94 }
 0x145   :  { %v102_v50 = vrot.slane %v95_v49, %v101_v48 }
 0x147   :  { %v104_v52 = vmul.f32 %v102_v50, %v258_v0  ;;  %v105_v53 = vmul.f32 %v102_v50, %v260_v1 }
 0x148   :  { %v109_v51 = vpop.permute.xlu1 %108 }
 0x149   :  { %v116_v54 = vrot.slane %v109_v51, %v101_v48 }
 0x14b   :  { %v118_v55 = vadd.f32 %v116_v54, %v104_v52  ;;  %v119_v56 = vadd.f32 %v116_v54, %v105_v53 }
 0x14d   :  { %120 = vst [vmem:[#allocation5] sm:$0xff] %v118_v55  ;;  %121 = vst [vmem:[#allocation5 + $0x8] sm:$0xff] %v119_v56 }
 0x14e   :  { %192 = shalt.err (!%p189_p12)
}
 0x14f   :  { %s193_s17 = scalar_lea.hbm %s319_s3, 256 }
 0x150   :  { %p194_p13 = scmp.ne.s32.totalorder %s319_s3, %s193_s17  ;;  %p197_p0 = scmp.lt.u32.totalorder %s193_s17, %s319_s3 }
 0x152   :  { %p199_p1 = pnand %p197_p0, %p194_p13 }
 0x154   :  { %202 = shalt.err (!%p199_p1)
}
 0x155   :  { %133 = dma.vmem_to_hbm [thread:$0]  %s128_s5, 256, %s319_s3, [#allocation4], %s208_s28, %s208_s28, %s209_s29  }
 0x156   :  { %205 = dma.done.wait [#allocation4], 256  }
 0x157   :  { %206 = vsyncadd [#allocation4], 4294967040 }
 0x158   :  { %145 = vsyncpa [#allocation3], 1 }
 0x159   :  { %146 = vsyncpa [#allocation4], 1 }

</bundles_post_ra>
